<compile_context>
chip_gen: v6e
topology: v6e:2x2x1
jax: 0.10.0
libtpu: 0.0.40
codegen_flags: <defaults>
</compile_context>

<pallas_src>
import jax
import jax.numpy as jnp
from jax.experimental import pallas as pl
from jax.experimental.pallas import tpu as pltpu


def _agmi_kernel(xc, wg1, bg1, wg2, bg2, wc, bc,
                 xd, adj, wgcn, bgcn, pdt,
                 wh1a, wh1b, bh1, wh2t, bh2, out):
    f32 = jnp.float32
    bf16 = jnp.bfloat16

    def mm(a, b):  # MXU matmul: bf16 operands, f32 accumulation
        return jnp.dot(a.astype(bf16), b.astype(bf16), preferred_element_type=f32)

    relu = lambda v: jnp.maximum(v, 0.0)

    # --- genes_encoder: 2-layer MLP per gene row, (G, C) -> (G, C) -----------
    x = xc[0]                                          # (G, C)  bf16
    h = relu(mm(x, wg1[...]) + bg1[...])               # (G, C)  f32
    g = mm(h, wg2[...]) + bg2[...]                     # (G, C)  f32

    # --- neck: Conv1d(C->H, k=3, pad=1) along the gene axis + ReLU + mean ----
    # (PyTorch's permute(0,2,1) into NCL is absorbed by operating gene-major.)
    G = g.shape[0]
    row = jax.lax.broadcasted_iota(jnp.int32, (G, 1), 0)
    g_prev = jnp.where(row == 0, 0.0, pltpu.roll(g, shift=1, axis=0))
    g_next = jnp.where(row == G - 1, 0.0, pltpu.roll(g, shift=G - 1, axis=0))
    xcat = jnp.concatenate([g_prev, g, g_next], axis=1)        # (G, 3C)
    conv = relu(mm(xcat, wc[...]) + bc[...])                   # (G, H) single MXU pass
    g_embed = jnp.mean(conv, axis=0, keepdims=True)            # (1, H) sublane reduce

    # --- drug_encoder: dense GCN layer + per-graph masked mean pool ----------
    # (tiny branch; recomputed per grid step so the batch axis stays parallel)
    agg = mm(adj[...], xd[...])                                # (N, Fd)
    hd = relu(mm(agg, wgcn[...]) + bgcn[...])                  # (N, Dd)
    drug_embed = jnp.sum(hd * pdt[0], axis=0, keepdims=True)   # (1, Dd) VPU reduce

    # --- head: fusion MLP; concat([drug, gene]) @ W == drug @ Wa + gene @ Wb -
    f = relu(mm(drug_embed, wh1a[...]) + mm(g_embed, wh1b[...]) + bh1[...])  # (1, Hh)
    y = jnp.sum(f * wh2t[...], axis=-1, keepdims=True) + bh2[...]            # (1, 1)
    out[...] = jnp.broadcast_to(y.reshape(1, 1, 1), (1, 1, out.shape[-1]))


def agmi_drper_forward(params, x_cell, x_d, edge_index, batch, batch_size=None):
    """Glue: builds small structural tensors, then runs one fused Pallas kernel."""
    f32, bf16 = jnp.float32, jnp.bfloat16
    B = int(batch.max()) + 1 if batch_size is None else batch_size
    BG, C = x_cell.shape
    assert BG % B == 0, "x_cell rows must be divisible by batch size"
    G = BG // B
    N, Fd = x_d.shape
    H = params["Wc1"].shape[1]
    Dd = params["Wgcn"].shape[1]
    Hh = params["Wh1a"].shape[1]

    # Dense normalized adjacency (self loops + mean aggregation) for the drug graph.
    A = jnp.zeros((N, N), f32).at[edge_index[0], edge_index[1]].set(1.0)
    A = A + jnp.eye(N, dtype=f32)
    A = A / jnp.sum(A, axis=1, keepdims=True)

    # Per-graph mean-pool weights as a (B, N, 1) mask (VPU reduce in-kernel).
    onehot = (jnp.arange(B)[:, None] == batch[None, :]).astype(f32)          # (B, N)
    counts = jnp.maximum(jnp.sum(onehot, axis=1, keepdims=True), 1.0)
    PdT = (onehot / counts)[:, :, None]                                      # (B, N, 1)

    # Stack the 3 conv taps into one (3C, H) weight -> one MXU pass in-kernel.
    Wc = jnp.concatenate([params["Wc0"], params["Wc1"], params["Wc2"]], axis=0)

    inputs = [
        x_cell.reshape(B, G, C).astype(bf16),                  # gene features per batch
        params["Wg1"].astype(bf16), params["bg1"],
        params["Wg2"].astype(bf16), params["bg2"],
        Wc.astype(bf16), params["bc"],
        x_d.astype(bf16), A.astype(bf16),
        params["Wgcn"].astype(bf16), params["bgcn"],
        PdT,
        params["Wh1a"].astype(bf16), params["Wh1b"].astype(bf16), params["bh1"],
        params["Wh2"].T,                                       # (1, Hh) for VPU reduce
        params["bh2"],
    ]

    def _full(shape):
        return pl.BlockSpec(shape, lambda *_: (0,) * len(shape))

    in_specs = [
        pl.BlockSpec((1, G, C), lambda b: (b, 0, 0)),          # x_cell tile (per batch)
        _full((C, C)), _full((1, C)), _full((C, C)), _full((1, C)),
        _full((3 * C, H)), _full((1, H)),
        _full((N, Fd)), _full((N, N)), _full((Fd, Dd)), _full((1, Dd)),
        pl.BlockSpec((1, N, 1), lambda b: (b, 0, 0)),          # per-graph pool mask
        _full((Dd, Hh)), _full((H, Hh)), _full((1, Hh)),
        _full((1, Hh)), _full((1, 1)),
    ]
    out_specs = pl.BlockSpec((1, 1, 128), lambda b: (b, 0, 0))  # lane-dense output

    flops = (2 * B * G * (2 * C * C + 3 * C * H)
             + 2 * B * (N * N * Fd + N * Fd * Dd + Dd * Hh + H * Hh))
    bytes_accessed = int(sum(a.size * a.dtype.itemsize for a in inputs)) + B * 128 * 4

    res = pl.pallas_call(
        _agmi_kernel,
        out_shape=jax.ShapeDtypeStruct((B, 1, 128), f32),
        grid=(B,),
        in_specs=in_specs,
        out_specs=out_specs,
        compiler_params=pltpu.CompilerParams(
            dimension_semantics=("parallel",),
            vmem_limit_bytes=32 * 1024 * 1024,
        ),
        cost_estimate=pl.CostEstimate(
            flops=flops, transcendentals=0, bytes_accessed=bytes_accessed),
    )(*inputs)
    return res[:, 0, :1]                                        # (B, 1)


def init_params(key, C=8, H=32, Fd=16, Dd=32, Hh=32):
    ks = jax.random.split(key, 9)
    n = lambda k, s: (0.1 * jax.random.normal(k, s)).astype(jnp.float32)
    z = lambda s: jnp.zeros(s, jnp.float32)
    return dict(
        Wg1=n(ks[0], (C, C)), bg1=z((1, C)),
        Wg2=n(ks[1], (C, C)), bg2=z((1, C)),
        Wc0=n(ks[2], (C, H)), Wc1=n(ks[3], (C, H)), Wc2=n(ks[4], (C, H)),
        bc=z((1, H)),
        Wgcn=n(ks[5], (Fd, Dd)), bgcn=z((1, Dd)),
        Wh1a=n(ks[6], (Dd, Hh)), Wh1b=n(ks[7], (H, Hh)), bh1=z((1, Hh)),
        Wh2=n(ks[8], (Hh, 1)), bh2=z((1, 1)),
    )


if __name__ == "__main__":
    key = jax.random.PRNGKey(0)
    B, G, C = 2, 16, 8          # batch, genes per cell line, channels
    N, Fd = 12, 16              # drug-graph nodes (total), node feature dim

    k1, k2, k3 = jax.random.split(key, 3)
    x_cell = jax.random.normal(k1, (B * G, C), jnp.float32)   # data.x_cell
    x_d = jax.random.normal(k2, (N, Fd), jnp.float32)         # data.x

    # Two chain graphs: nodes 0..6 -> graph 0, nodes 7..11 -> graph 1.
    src, dst = [], []
    for a, b in [(i, i + 1) for i in range(0, 6)] + [(i, i + 1) for i in range(7, 11)]:
        src += [a, b]
        dst += [b, a]
    edge_index = jnp.array([src, dst], jnp.int32)             # data.edge_index
    batch = jnp.array([0] * 7 + [1] * 5, jnp.int32)           # data.batch

    params = init_params(k3, C=C, Fd=Fd)
    out = agmi_drper_forward(params, x_cell, x_d, edge_index, batch, batch_size=B)
    out = jax.block_until_ready(out)
    assert out.shape == (B, 1) and out.dtype == jnp.float32
    print("KERNEL_OK")
</pallas_src>

<mosaic_0001>
module attributes {stable_mosaic.version = 11 : i64} {
  func.func @_agmi_kernel(%arg0: i32, %arg1: memref<1x16x8xbf16, #tpu.memory_space<vmem>>, %arg2: memref<8x8xbf16, #tpu.memory_space<vmem>>, %arg3: memref<1x8xf32, #tpu.memory_space<vmem>>, %arg4: memref<8x8xbf16, #tpu.memory_space<vmem>>, %arg5: memref<1x8xf32, #tpu.memory_space<vmem>>, %arg6: memref<24x32xbf16, #tpu.memory_space<vmem>>, %arg7: memref<1x32xf32, #tpu.memory_space<vmem>>, %arg8: memref<12x16xbf16, #tpu.memory_space<vmem>>, %arg9: memref<12x12xbf16, #tpu.memory_space<vmem>>, %arg10: memref<16x32xbf16, #tpu.memory_space<vmem>>, %arg11: memref<1x32xf32, #tpu.memory_space<vmem>>, %arg12: memref<1x12x1xf32, #tpu.memory_space<vmem>>, %arg13: memref<32x32xbf16, #tpu.memory_space<vmem>>, %arg14: memref<32x32xbf16, #tpu.memory_space<vmem>>, %arg15: memref<1x32xf32, #tpu.memory_space<vmem>>, %arg16: memref<1x32xf32, #tpu.memory_space<vmem>>, %arg17: memref<1x1xf32, #tpu.memory_space<vmem>>, %arg18: memref<1x1x128xf32, #tpu.memory_space<vmem>>) attributes {dimension_semantics = [#tpu.dimension_semantics<parallel>], iteration_bounds = array<i64: 2>, scalar_prefetch = 0 : i64, scratch_operands = 0 : i64, tpu.core_type = #tpu.core_type<tc>, window_params = [{transform_indices = @transform_0, window_bounds = array<i64: 1, 16, 8>}, {pipeline_mode = #tpu.pipeline_mode<synchronous>, transform_indices = @transform_1, window_bounds = array<i64: 8, 8>}, {pipeline_mode = #tpu.pipeline_mode<synchronous>, transform_indices = @transform_2, window_bounds = array<i64: 1, 8>}, {pipeline_mode = #tpu.pipeline_mode<synchronous>, transform_indices = @transform_3, window_bounds = array<i64: 8, 8>}, {pipeline_mode = #tpu.pipeline_mode<synchronous>, transform_indices = @transform_4, window_bounds = array<i64: 1, 8>}, {pipeline_mode = #tpu.pipeline_mode<synchronous>, transform_indices = @transform_5, window_bounds = array<i64: 24, 32>}, {pipeline_mode = #tpu.pipeline_mode<synchronous>, transform_indices = @transform_6, window_bounds = array<i64: 1, 32>}, {pipeline_mode = #tpu.pipeline_mode<synchronous>, transform_indices = @transform_7, window_bounds = array<i64: 12, 16>}, {pipeline_mode = #tpu.pipeline_mode<synchronous>, transform_indices = @transform_8, window_bounds = array<i64: 12, 12>}, {pipeline_mode = #tpu.pipeline_mode<synchronous>, transform_indices = @transform_9, window_bounds = array<i64: 16, 32>}, {pipeline_mode = #tpu.pipeline_mode<synchronous>, transform_indices = @transform_10, window_bounds = array<i64: 1, 32>}, {transform_indices = @transform_11, window_bounds = array<i64: 1, 12, 1>}, {pipeline_mode = #tpu.pipeline_mode<synchronous>, transform_indices = @transform_12, window_bounds = array<i64: 32, 32>}, {pipeline_mode = #tpu.pipeline_mode<synchronous>, transform_indices = @transform_13, window_bounds = array<i64: 32, 32>}, {pipeline_mode = #tpu.pipeline_mode<synchronous>, transform_indices = @transform_14, window_bounds = array<i64: 1, 32>}, {pipeline_mode = #tpu.pipeline_mode<synchronous>, transform_indices = @transform_15, window_bounds = array<i64: 1, 32>}, {pipeline_mode = #tpu.pipeline_mode<synchronous>, transform_indices = @transform_16, window_bounds = array<i64: 1, 1>}, {transform_indices = @transform_17, window_bounds = array<i64: 1, 1, 128>}]} {
    %c0 = arith.constant 0 : index
    %c0_0 = arith.constant 0 : index
    %c0_1 = arith.constant 0 : index
    %0 = vector.load %arg1[%c0, %c0_0, %c0_1] : memref<1x16x8xbf16, #tpu.memory_space<vmem>>, vector<1x16x8xbf16>
    %1 = vector.shape_cast %0 : vector<1x16x8xbf16> to vector<16x8xbf16>
    %c0_2 = arith.constant 0 : index
    %c0_3 = arith.constant 0 : index
    %2 = vector.load %arg2[%c0_2, %c0_3] : memref<8x8xbf16, #tpu.memory_space<vmem>>, vector<8x8xbf16>
    %cst = arith.constant dense<0.000000e+00> : vector<16x8xf32>
    %3 = tpu.matmul %1, %2, %cst {dimension_numbers = #tpu.dot_dimension_numbers<[1], [0], [0], [1], [0, 0, 1, 1], [], []>} : vector<16x8xbf16>, vector<8x8xbf16>, vector<16x8xf32> -> vector<16x8xf32>
    %c0_4 = arith.constant 0 : index
    %c0_5 = arith.constant 0 : index
    %4 = vector.load %arg3[%c0_4, %c0_5] : memref<1x8xf32, #tpu.memory_space<vmem>>, vector<1x8xf32>
    %5 = vector.broadcast %4 : vector<1x8xf32> to vector<16x8xf32>
    %6 = arith.addf %3, %5 : vector<16x8xf32>
    %cst_6 = arith.constant 0.000000e+00 : f32
    %7 = vector.broadcast %cst_6 : f32 to vector<16x8xf32>
    %8 = arith.maximumf %6, %7 : vector<16x8xf32>
    %c0_7 = arith.constant 0 : index
    %c0_8 = arith.constant 0 : index
    %9 = vector.load %arg4[%c0_7, %c0_8] : memref<8x8xbf16, #tpu.memory_space<vmem>>, vector<8x8xbf16>
    %10 = arith.truncf %8 : vector<16x8xf32> to vector<16x8xbf16>
    %cst_9 = arith.constant dense<0.000000e+00> : vector<16x8xf32>
    %11 = tpu.matmul %10, %9, %cst_9 {dimension_numbers = #tpu.dot_dimension_numbers<[1], [0], [0], [1], [0, 0, 1, 1], [], []>} : vector<16x8xbf16>, vector<8x8xbf16>, vector<16x8xf32> -> vector<16x8xf32>
    %c0_10 = arith.constant 0 : index
    %c0_11 = arith.constant 0 : index
    %12 = vector.load %arg5[%c0_10, %c0_11] : memref<1x8xf32, #tpu.memory_space<vmem>>, vector<1x8xf32>
    %13 = vector.broadcast %12 : vector<1x8xf32> to vector<16x8xf32>
    %14 = arith.addf %11, %13 : vector<16x8xf32>
    %15 = tpu.iota {dimensions = array<i32: 0>} : vector<16x1xi32>
    %c0_i32 = arith.constant 0 : i32
    %16 = vector.broadcast %c0_i32 : i32 to vector<16x1xi32>
    %17 = arith.cmpi eq, %15, %16 : vector<16x1xi32>
    %c1_i32 = arith.constant 1 : i32
    %18 = tpu.dynamic_rotate %14 by %c1_i32 dim 0 : vector<16x8xf32>, i32 -> vector<16x8xf32>
    %cst_12 = arith.constant 0.000000e+00 : f32
    %19 = vector.shape_cast %17 : vector<16x1xi1> to vector<16x1xi1>
    %20 = vector.broadcast %19 : vector<16x1xi1> to vector<16x8xi1>
    %21 = vector.broadcast %cst_12 : f32 to vector<16x8xf32>
    %22 = arith.select %20, %21, %18 : vector<16x8xi1>, vector<16x8xf32>
    %c15_i32 = arith.constant 15 : i32
    %23 = vector.broadcast %c15_i32 : i32 to vector<16x1xi32>
    %24 = arith.cmpi eq, %15, %23 : vector<16x1xi32>
    %c15_i32_13 = arith.constant 15 : i32
    %25 = tpu.dynamic_rotate %14 by %c15_i32_13 dim 0 : vector<16x8xf32>, i32 -> vector<16x8xf32>
    %cst_14 = arith.constant 0.000000e+00 : f32
    %26 = vector.shape_cast %24 : vector<16x1xi1> to vector<16x1xi1>
    %27 = vector.broadcast %26 : vector<16x1xi1> to vector<16x8xi1>
    %28 = vector.broadcast %cst_14 : f32 to vector<16x8xf32>
    %29 = arith.select %27, %28, %25 : vector<16x8xi1>, vector<16x8xf32>
    %30 = tpu.concatenate %22, %14, %29 in 1 : vector<16x8xf32>, vector<16x8xf32>, vector<16x8xf32> -> vector<16x24xf32>
    %c0_15 = arith.constant 0 : index
    %c0_16 = arith.constant 0 : index
    %31 = vector.load %arg6[%c0_15, %c0_16] : memref<24x32xbf16, #tpu.memory_space<vmem>>, vector<24x32xbf16>
    %32 = arith.truncf %30 : vector<16x24xf32> to vector<16x24xbf16>
    %cst_17 = arith.constant dense<0.000000e+00> : vector<16x32xf32>
    %33 = tpu.matmul %32, %31, %cst_17 {dimension_numbers = #tpu.dot_dimension_numbers<[1], [0], [0], [1], [0, 0, 1, 1], [], []>} : vector<16x24xbf16>, vector<24x32xbf16>, vector<16x32xf32> -> vector<16x32xf32>
    %c0_18 = arith.constant 0 : index
    %c0_19 = arith.constant 0 : index
    %34 = vector.load %arg7[%c0_18, %c0_19] : memref<1x32xf32, #tpu.memory_space<vmem>>, vector<1x32xf32>
    %35 = vector.broadcast %34 : vector<1x32xf32> to vector<16x32xf32>
    %36 = arith.addf %33, %35 : vector<16x32xf32>
    %cst_20 = arith.constant 0.000000e+00 : f32
    %37 = vector.broadcast %cst_20 : f32 to vector<16x32xf32>
    %38 = arith.maximumf %36, %37 : vector<16x32xf32>
    %cst_21 = arith.constant dense<0.000000e+00> : vector<32xf32>
    %39 = vector.multi_reduction <add>, %38, %cst_21 [0] : vector<16x32xf32> to vector<32xf32>
    %40 = vector.shape_cast %39 : vector<32xf32> to vector<1x32xf32>
    %cst_22 = arith.constant 1.600000e+01 : f32
    %41 = vector.broadcast %cst_22 : f32 to vector<1x32xf32>
    %42 = arith.divf %40, %41 : vector<1x32xf32>
    %c0_23 = arith.constant 0 : index
    %c0_24 = arith.constant 0 : index
    %43 = vector.load %arg9[%c0_23, %c0_24] : memref<12x12xbf16, #tpu.memory_space<vmem>>, vector<12x12xbf16>
    %c0_25 = arith.constant 0 : index
    %c0_26 = arith.constant 0 : index
    %44 = vector.load %arg8[%c0_25, %c0_26] : memref<12x16xbf16, #tpu.memory_space<vmem>>, vector<12x16xbf16>
    %cst_27 = arith.constant dense<0.000000e+00> : vector<12x16xf32>
    %45 = tpu.matmul %43, %44, %cst_27 {dimension_numbers = #tpu.dot_dimension_numbers<[1], [0], [0], [1], [0, 0, 1, 1], [], []>} : vector<12x12xbf16>, vector<12x16xbf16>, vector<12x16xf32> -> vector<12x16xf32>
    %c0_28 = arith.constant 0 : index
    %c0_29 = arith.constant 0 : index
    %46 = vector.load %arg10[%c0_28, %c0_29] : memref<16x32xbf16, #tpu.memory_space<vmem>>, vector<16x32xbf16>
    %47 = arith.truncf %45 : vector<12x16xf32> to vector<12x16xbf16>
    %cst_30 = arith.constant dense<0.000000e+00> : vector<12x32xf32>
    %48 = tpu.matmul %47, %46, %cst_30 {dimension_numbers = #tpu.dot_dimension_numbers<[1], [0], [0], [1], [0, 0, 1, 1], [], []>} : vector<12x16xbf16>, vector<16x32xbf16>, vector<12x32xf32> -> vector<12x32xf32>
    %c0_31 = arith.constant 0 : index
    %c0_32 = arith.constant 0 : index
    %49 = vector.load %arg11[%c0_31, %c0_32] : memref<1x32xf32, #tpu.memory_space<vmem>>, vector<1x32xf32>
    %50 = vector.broadcast %49 : vector<1x32xf32> to vector<12x32xf32>
    %51 = arith.addf %48, %50 : vector<12x32xf32>
    %cst_33 = arith.constant 0.000000e+00 : f32
    %52 = vector.broadcast %cst_33 : f32 to vector<12x32xf32>
    %53 = arith.maximumf %51, %52 : vector<12x32xf32>
    %c0_34 = arith.constant 0 : index
    %c0_35 = arith.constant 0 : index
    %c0_36 = arith.constant 0 : index
    %54 = vector.load %arg12[%c0_34, %c0_35, %c0_36] : memref<1x12x1xf32, #tpu.memory_space<vmem>>, vector<1x12x1xf32>
    %55 = vector.shape_cast %54 : vector<1x12x1xf32> to vector<12x1xf32>
    %56 = vector.broadcast %55 : vector<12x1xf32> to vector<12x32xf32>
    %57 = arith.mulf %53, %56 : vector<12x32xf32>
    %cst_37 = arith.constant dense<0.000000e+00> : vector<32xf32>
    %58 = vector.multi_reduction <add>, %57, %cst_37 [0] : vector<12x32xf32> to vector<32xf32>
    %59 = vector.shape_cast %58 : vector<32xf32> to vector<1x32xf32>
    %c0_38 = arith.constant 0 : index
    %c0_39 = arith.constant 0 : index
    %60 = vector.load %arg13[%c0_38, %c0_39] : memref<32x32xbf16, #tpu.memory_space<vmem>>, vector<32x32xbf16>
    %61 = arith.truncf %59 : vector<1x32xf32> to vector<1x32xbf16>
    %cst_40 = arith.constant dense<0.000000e+00> : vector<1x32xf32>
    %62 = tpu.matmul %61, %60, %cst_40 {dimension_numbers = #tpu.dot_dimension_numbers<[1], [0], [0], [1], [0, 0, 1, 1], [], []>} : vector<1x32xbf16>, vector<32x32xbf16>, vector<1x32xf32> -> vector<1x32xf32>
    %c0_41 = arith.constant 0 : index
    %c0_42 = arith.constant 0 : index
    %63 = vector.load %arg14[%c0_41, %c0_42] : memref<32x32xbf16, #tpu.memory_space<vmem>>, vector<32x32xbf16>
    %64 = arith.truncf %42 : vector<1x32xf32> to vector<1x32xbf16>
    %cst_43 = arith.constant dense<0.000000e+00> : vector<1x32xf32>
    %65 = tpu.matmul %64, %63, %cst_43 {dimension_numbers = #tpu.dot_dimension_numbers<[1], [0], [0], [1], [0, 0, 1, 1], [], []>} : vector<1x32xbf16>, vector<32x32xbf16>, vector<1x32xf32> -> vector<1x32xf32>
    %66 = arith.addf %62, %65 : vector<1x32xf32>
    %c0_44 = arith.constant 0 : index
    %c0_45 = arith.constant 0 : index
    %67 = vector.load %arg15[%c0_44, %c0_45] : memref<1x32xf32, #tpu.memory_space<vmem>>, vector<1x32xf32>
    %68 = arith.addf %66, %67 : vector<1x32xf32>
    %cst_46 = arith.constant 0.000000e+00 : f32
    %69 = vector.broadcast %cst_46 : f32 to vector<1x32xf32>
    %70 = arith.maximumf %68, %69 : vector<1x32xf32>
    %c0_47 = arith.constant 0 : index
    %c0_48 = arith.constant 0 : index
    %71 = vector.load %arg16[%c0_47, %c0_48] : memref<1x32xf32, #tpu.memory_space<vmem>>, vector<1x32xf32>
    %72 = arith.mulf %70, %71 : vector<1x32xf32>
    %cst_49 = arith.constant dense<0.000000e+00> : vector<1xf32>
    %73 = vector.multi_reduction <add>, %72, %cst_49 [1] : vector<1x32xf32> to vector<1xf32>
    %74 = vector.shape_cast %73 : vector<1xf32> to vector<1x1xf32>
    %c0_50 = arith.constant 0 : index
    %c0_51 = arith.constant 0 : index
    %75 = vector.load %arg17[%c0_50, %c0_51] : memref<1x1xf32, #tpu.memory_space<vmem>>, vector<1x1xf32>
    %76 = arith.addf %74, %75 : vector<1x1xf32>
    %77 = vector.shape_cast %76 : vector<1x1xf32> to vector<1x1x1xf32>
    %78 = vector.shape_cast %77 : vector<1x1x1xf32> to vector<1x1x1xf32>
    %79 = vector.broadcast %78 : vector<1x1x1xf32> to vector<1x1x128xf32>
    %c0_52 = arith.constant 0 : index
    %c0_53 = arith.constant 0 : index
    %c0_54 = arith.constant 0 : index
    %80 = vector.load %arg18[%c0_52, %c0_53, %c0_54] : memref<1x1x128xf32, #tpu.memory_space<vmem>>, vector<1x1x128xf32>
    tpu.vector_store %arg18[%c0_52, %c0_53, %c0_54], %79 {strides = array<i32>} : memref<1x1x128xf32, #tpu.memory_space<vmem>>, vector<1x1x128xf32>,
    return
  }
  func.func @transform_0(%arg0: i32) -> (i32, i32, i32) {
    %c0_i32 = arith.constant 0 : i32
    %c0_i32_0 = arith.constant 0 : i32
    %c0_i32_1 = arith.constant 0 : i32
    return %arg0, %c0_i32, %c0_i32_0 : i32, i32, i32
  }
  func.func @transform_1(%arg0: i32) -> (i32, i32) {
    %c0_i32 = arith.constant 0 : i32
    %c0_i32_0 = arith.constant 0 : i32
    %c0_i32_1 = arith.constant 0 : i32
    return %c0_i32, %c0_i32_0 : i32, i32
  }
  func.func @transform_2(%arg0: i32) -> (i32, i32) {
    %c0_i32 = arith.constant 0 : i32
    %c0_i32_0 = arith.constant 0 : i32
    %c0_i32_1 = arith.constant 0 : i32
    return %c0_i32, %c0_i32_0 : i32, i32
  }
  func.func @transform_3(%arg0: i32) -> (i32, i32) {
    %c0_i32 = arith.constant 0 : i32
    %c0_i32_0 = arith.constant 0 : i32
    %c0_i32_1 = arith.constant 0 : i32
    return %c0_i32, %c0_i32_0 : i32, i32
  }
  func.func @transform_4(%arg0: i32) -> (i32, i32) {
    %c0_i32 = arith.constant 0 : i32
    %c0_i32_0 = arith.constant 0 : i32
    %c0_i32_1 = arith.constant 0 : i32
    return %c0_i32, %c0_i32_0 : i32, i32
  }
  func.func @transform_5(%arg0: i32) -> (i32, i32) {
    %c0_i32 = arith.constant 0 : i32
    %c0_i32_0 = arith.constant 0 : i32
    %c0_i32_1 = arith.constant 0 : i32
    return %c0_i32, %c0_i32_0 : i32, i32
  }
  func.func @transform_6(%arg0: i32) -> (i32, i32) {
    %c0_i32 = arith.constant 0 : i32
    %c0_i32_0 = arith.constant 0 : i32
    %c0_i32_1 = arith.constant 0 : i32
    return %c0_i32, %c0_i32_0 : i32, i32
  }
  func.func @transform_7(%arg0: i32) -> (i32, i32) {
    %c0_i32 = arith.constant 0 : i32
    %c0_i32_0 = arith.constant 0 : i32
    %c0_i32_1 = arith.constant 0 : i32
    return %c0_i32, %c0_i32_0 : i32, i32
  }
  func.func @transform_8(%arg0: i32) -> (i32, i32) {
    %c0_i32 = arith.constant 0 : i32
    %c0_i32_0 = arith.constant 0 : i32
    %c0_i32_1 = arith.constant 0 : i32
    return %c0_i32, %c0_i32_0 : i32, i32
  }
  func.func @transform_9(%arg0: i32) -> (i32, i32) {
    %c0_i32 = arith.constant 0 : i32
    %c0_i32_0 = arith.constant 0 : i32
    %c0_i32_1 = arith.constant 0 : i32
    return %c0_i32, %c0_i32_0 : i32, i32
  }
  func.func @transform_10(%arg0: i32) -> (i32, i32) {
    %c0_i32 = arith.constant 0 : i32
    %c0_i32_0 = arith.constant 0 : i32
    %c0_i32_1 = arith.constant 0 : i32
    return %c0_i32, %c0_i32_0 : i32, i32
  }
  func.func @transform_11(%arg0: i32) -> (i32, i32, i32) {
    %c0_i32 = arith.constant 0 : i32
    %c0_i32_0 = arith.constant 0 : i32
    %c0_i32_1 = arith.constant 0 : i32
    return %arg0, %c0_i32, %c0_i32_0 : i32, i32, i32
  }
  func.func @transform_12(%arg0: i32) -> (i32, i32) {
    %c0_i32 = arith.constant 0 : i32
    %c0_i32_0 = arith.constant 0 : i32
    %c0_i32_1 = arith.constant 0 : i32
    return %c0_i32, %c0_i32_0 : i32, i32
  }
  func.func @transform_13(%arg0: i32) -> (i32, i32) {
    %c0_i32 = arith.constant 0 : i32
    %c0_i32_0 = arith.constant 0 : i32
    %c0_i32_1 = arith.constant 0 : i32
    return %c0_i32, %c0_i32_0 : i32, i32
  }
  func.func @transform_14(%arg0: i32) -> (i32, i32) {
    %c0_i32 = arith.constant 0 : i32
    %c0_i32_0 = arith.constant 0 : i32
    %c0_i32_1 = arith.constant 0 : i32
    return %c0_i32, %c0_i32_0 : i32, i32
  }
  func.func @transform_15(%arg0: i32) -> (i32, i32) {
    %c0_i32 = arith.constant 0 : i32
    %c0_i32_0 = arith.constant 0 : i32
    %c0_i32_1 = arith.constant 0 : i32
    return %c0_i32, %c0_i32_0 : i32, i32
  }
  func.func @transform_16(%arg0: i32) -> (i32, i32) {
    %c0_i32 = arith.constant 0 : i32
    %c0_i32_0 = arith.constant 0 : i32
    %c0_i32_1 = arith.constant 0 : i32
    return %c0_i32, %c0_i32_0 : i32, i32
  }
  func.func @transform_17(%arg0: i32) -> (i32, i32, i32) {
    %c0_i32 = arith.constant 0 : i32
    %c0_i32_0 = arith.constant 0 : i32
    %c0_i32_1 = arith.constant 0 : i32
    return %arg0, %c0_i32, %c0_i32_0 : i32, i32, i32
  }
}

</mosaic_0001>

<bundles_post_ra>
// kernel: tpu_custom_call.1
= control target key start
LH: loop header
LB: loop body
LE: loop exit
PB: predicated region body
PF: predicated region fallthrough
CT: control target
= control target key end

     0   :  { %s2083_s0 = inlined_call_operand.vmem [shape: bf16[2,16,8], index: 0, kind: input, shape index: {}]   ;;  %s2084_s1 = inlined_call_operand.hbm [shape: bf16[8,8], index: 1, kind: input, shape index: {}]   ;;  %s2085_s2 = inlined_call_operand.hbm [shape: f32[1,8], index: 2, kind: input, shape index: {}]   ;;  %s2086_s3 = inlined_call_operand.hbm [shape: bf16[8,8], index: 3, kind: input, shape index: {}]   ;;  %s2087_s4 = inlined_call_operand.hbm [shape: f32[1,8], index: 4, kind: input, shape index: {}]   ;;  %s2088_s5 = inlined_call_operand.vmem [shape: bf16[24,32], index: 5, kind: input, shape index: {}]   ;;  %s2089_s6 = inlined_call_operand.hbm [shape: f32[1,32], index: 6, kind: input, shape index: {}]   ;;  %s2090_s7 = inlined_call_operand.vmem [shape: bf16[12,16], index: 7, kind: input, shape index: {}]   ;;  %s2091_s8 = inlined_call_operand.vmem [shape: bf16[12,12], index: 8, kind: input, shape index: {}]   ;;  %s2092_s9 = inlined_call_operand.vmem [shape: bf16[16,32], index: 9, kind: input, shape index: {}]   ;;  %s2093_s10 = inlined_call_operand.vmem [shape: f32[1,32], index: 10, kind: input, shape index: {}]   ;;  %s2094_s11 = inlined_call_operand.vmem [shape: f32[2,12,1], index: 11, kind: input, shape index: {}]   ;;  %s2095_s12 = inlined_call_operand.vmem [shape: bf16[32,32], index: 12, kind: input, shape index: {}]   ;;  %s2096_s13 = inlined_call_operand.vmem [shape: bf16[32,32], index: 13, kind: input, shape index: {}]   ;;  %s2097_s14 = inlined_call_operand.vmem [shape: f32[1,32], index: 14, kind: input, shape index: {}]   ;;  %s2098_s15 = inlined_call_operand.vmem [shape: f32[1,32], index: 15, kind: input, shape index: {}]   ;;  %s2099_s16 = inlined_call_operand.<no memory space> [shape: f32[1,1], index: 16, kind: input, shape index: {}]   ;;  %s2100_s17 = inlined_call_operand.hbm [shape: f32[2,1,128], index: 17, kind: output, shape index: {}]  }
   0x1   :  { %2109 = sst [smem:[#allocation22_spill]] %s2083_s0  ;;  %v22_v0 = vstv %s2099_s16 }
   0x2   :  { %2110 = sst [smem:[#allocation23_spill]] %s2084_s1  ;;  %23 = vst [vmem:[#allocation2] sm:$0x1] %v22_v0 }
   0x3   :  { %2111 = sst [smem:[#allocation24_spill]] %s2085_s2 }
   0x4   :  { %24 = vsyncpa [#allocation4], 0 }
   0x5   :  { %25 = vsyncpa [#allocation7], 0 }
   0x6   :  { %26 = vsyncpa [#allocation10], 0 }
   0x7   :  { %27 = vsyncpa [#allocation5], 0 }
   0x8   :  { %29 = vsyncpa [#allocation5 + $0x1], 0  ;;  %s1836_s26 = smov 0   ;;  %s1838_s27 = smov 0  }
   0x9   :  { %s1840_s28 = smov 0   ;;  %s1842_s29 = smov 0  }
   0xa LB: > { %2112 = sst [smem:[#allocation17_spill]] %s1718_s26  ;;  %s1857_s16 = sadd.s32 4294967295, %s1730_s29   ;;  %s1730_s29 = sphi %s1842_s29, %s2136_s29   ;;  %s1726_s28 = sphi %s1840_s28, %s2138_s28   ;;  %s1722_s27 = sphi %s1838_s27, %s2140_s27   ;;  %s1718_s26 = sphi %s1836_s26, %s2139_s26  }
   0xb   : > { %2113 = sst [smem:[#allocation18_spill]] %s1726_s28  ;;  %s1302_s0 = sadd.s32 4294967294, %s1730_s29  }
   0xc   : > { %s1861_s30 = sadd.s32 1, %s1730_s29   ;;  %s409_s18 = sadd.s32 1, %s1726_s28 }
   0xd   : > { %2114 = sst [smem:[#allocation19_spill]] %s1861_s30  ;;  %s406_s19 = ssub.s32 %s1730_s29, %s1861_s30 }
   0xe   : > { %p419_p0 = scmp.ne.s32.totalorder %s1726_s28, %s1722_s27  ;;  %p407_p1 = scmp.eq.s32.totalorder %s406_s19, 0 }
   0xf   : > { %p420_p2 = scmp.eq.s32.totalorder %s1857_s16, 1  ;;  %p425_p3 = scmp.ne.s32.totalorder %s1722_s27, %s1718_s26 }
  0x10   : > { %p426_p4 = scmp.eq.s32.totalorder %s1302_s0, 1  ;;  %p1303_p7 = scmp.ge.s32.totalorder %s1730_s29, 1 }
  0x11   : > { %s1872_s1 = scalar_select %p407_p1, %s1726_s28, %s409_s18  }
  0x12   : > { %p1874_p5 = por %p420_p2, %p419_p0  ;;  %p1878_p6 = por %p426_p4, %p425_p3 }
  0x13   : > { %2115 = sst [smem:[#allocation20_spill]] %s1872_s1  ;;  %p433_p8 = scmp.lt.s32.totalorder %s1730_s29, 3 }
  0x14   : > { %s2116_s20 = scalar_select %p1874_p5, 1, 0 }
  0x15   : > { %s2117_s21 = scalar_select %p1878_p6, 1, 0 }
  0x16   : > { %p2105_p9 = scmp.eq.s32.totalorder %s1857_s16, 0  ;;  %p1885_p10 = pnand %p1303_p7, %p433_p8 }
  0x17   : > { %2118 = sst [smem:[#allocation21_spill]] %s2117_s21  ;;  %s1732_s23 = smov [#allocation6]  }
  0x18   : > { %s2119_s22 = scalar_select %p1885_p10, 1, 0 }
  0x19   : > { %s457_s24 = sshll.u32 %s1732_s23, 4  ;;  %p1433_p11 = pneg %p1885_p10  ;;  %s458_s24 = int_to_ptr.vmem [resolvable:$true] %s457_s24 }
  0x1a   : > { %s1733_s25 = smov [#allocation9]   ;;  %s1734_s19 = smov [#allocation3]  }
  0x1b   : > { %s479_s0 = sshll.u32 %s1733_s25, 4  ;;  %p1893_p12 = pnand %p2105_p9, %p1433_p11  ;;  %s480_s0 = int_to_ptr.vmem [resolvable:$true] %s479_s0 }
  0x1c   : > { %s446_s1 = sshll.u32 %s1734_s19, 4  ;;  %s1539_s23 = scalar_lea.vmem %s458_s24, 16  ;;  %s1897_s1 = int_to_ptr.vmem [resolvable:$true] %s446_s1 }
  0x1d   : > { %p1901_p13 = pneg %p1893_p12  ;;  %p1540_p0 = scmp.ne.s32.totalorder %s458_s24, %s1539_s23 }
  0x1e   : > { %s1546_s25 = scalar_lea.vmem %s458_s24, 32  ;;  %p1547_p3 = scmp.lt.s32.totalorder %s458_s24, %s458_s24 }
  0x1f   : > { %p1542_p1 = pnand %p1540_p0, %p1901_p13  ;;  %p1548_p4 = scmp.lt.s32.totalorder %s1546_s25, %s1539_s23 }
  0x21   : > { %p1543_p2 = pneg %p1542_p1  ;;  %p1549_p7 = por %p1548_p4, %p1547_p3 }
  0x23   : > { %p1550_p8 = pnand %p1549_p7, %p1543_p2 }
  0x25   : > { %1553 = shalt.err (!%p1550_p8)
}
  0x26   : > { %s2122_s2 = sld [smem:[#allocation24_spill]]  ;;  %s1565_s21 = scalar_lea.vmem %s480_s0, 16 }
  0x27   : > { %p1566_p11 = scmp.ne.s32.totalorder %s480_s0, %s1565_s21  ;;  %s1572_s26 = scalar_lea.vmem %s480_s0, 32 }
  0x28   : > { %p1573_p0 = scmp.lt.s32.totalorder %s480_s0, %s480_s0  ;;  %p1574_p1 = scmp.lt.s32.totalorder %s1572_s26, %s1565_s21 }
  0x29   : > { %p1568_p9 = pnand %p1566_p11, %p1901_p13 }
  0x2a   : > { %p1575_p5 = por %p1574_p1, %p1573_p0 }
  0x2b   : > { %p1569_p6 = pneg %p1568_p9 }
  0x2c   : > { %1439 = dma.hbm_to_vmem [thread:$0]  (!%p1893_p12), %s2122_s2, 16, %s458_s24, [#allocation7]  }
  0x2d   : > { %p1576_p10 = pnand %p1575_p5, %p1569_p6 }
  0x2f   : > { %1579 = shalt.err (!%p1576_p10)
}
  0x30   : > { %1445 = dma.hbm_to_vmem [thread:$0]  (!%p1893_p12), %s2087_s4, 16, %s480_s0, [#allocation10]  }
  0x31   : > { %s1591_s30 = scalar_lea.vmem %s1897_s1, 64  ;;  %p1599_p4 = scmp.lt.s32.totalorder %s1897_s1, %s1897_s1 }
  0x32   : > { %p1592_p2 = scmp.ne.s32.totalorder %s1897_s1, %s1591_s30  ;;  %p1600_p7 = scmp.lt.s32.totalorder %s1591_s30, %s1591_s30 }
  0x34   : > { %p1594_p9 = pnand %p1592_p2, %p1901_p13  ;;  %p1601_p5 = por %p1600_p7, %p1599_p4 }
  0x36   : > { %p1595_p3 = pneg %p1594_p9 }
  0x38   : > { %p1602_p6 = pnand %p1601_p5, %p1595_p3 }
  0x3a   : > { %1605 = shalt.err (!%p1602_p6)
}
  0x3b   : > { %s2123_s24 = sld [smem:[#allocation23_spill]]  ;;  %s1735_s0 = smov [#allocation8]  }
  0x3c   : > { %s468_s19 = sshll.u32 %s1735_s0, 4  ;;  %s1736_s23 = smov [#allocation11]   ;;  %s469_s19 = int_to_ptr.vmem [resolvable:$true] %s468_s19 }
  0x3d   : > { %s493_s25 = sshll.u32 %s1736_s23, 4  ;;  %s1617_s2 = scalar_lea.vmem %s469_s19, 64  ;;  %s494_s25 = int_to_ptr.vmem [resolvable:$true] %s493_s25 }
  0x3e   : > { %p1618_p10 = scmp.ne.s32.totalorder %s469_s19, %s1617_s2  ;;  %p1625_p0 = scmp.lt.s32.totalorder %s469_s19, %s469_s19 }
  0x3f   : > { %p1626_p1 = scmp.lt.s32.totalorder %s1617_s2, %s1617_s2 }
  0x40   : > { %p1620_p8 = pnand %p1618_p10, %p1901_p13 }
  0x41   : > { %1436 = dma.hbm_to_vmem [thread:$0]  (!%p1893_p12), %s2123_s24, 64, %s1897_s1, [#allocation4]  }
  0x42   : > { %p1621_p11 = pneg %p1620_p8  ;;  %p1627_p2 = por %p1626_p1, %p1625_p0 }
  0x44   : > { %p1628_p9 = pnand %p1627_p2, %p1621_p11 }
  0x46   : > { %1631 = shalt.err (!%p1628_p9)
}
  0x47   : > { %1442 = dma.hbm_to_vmem [thread:$0]  (!%p1893_p12), %s2086_s3, 64, %s469_s19, [#allocation7]  }
  0x48   : > { %s1643_s1 = scalar_lea.vmem %s494_s25, 16  ;;  %s1650_s21 = scalar_lea.vmem %s494_s25, 32 }
  0x49   : > { %p1644_p3 = scmp.ne.s32.totalorder %s494_s25, %s1643_s1  ;;  %p1651_p5 = scmp.lt.s32.totalorder %s494_s25, %s494_s25 }
  0x4a   : > { %p1652_p6 = scmp.lt.s32.totalorder %s1650_s21, %s1643_s1 }
  0x4b   : > { %p1646_p4 = pnand %p1644_p3, %p1901_p13 }
  0x4c   : > { %p1653_p10 = por %p1652_p6, %p1651_p5 }
  0x4d   : > { %p1647_p7 = pneg %p1646_p4 }
  0x4f   : > { %p1654_p8 = pnand %p1653_p10, %p1647_p7 }
  0x51   : > { %1657 = shalt.err (!%p1654_p8)
}
  0x52   : > { %1448 = dma.hbm_to_vmem [thread:$0]  (!%p1893_p12), %s2089_s6, 16, %s494_s25, [#allocation10]  }
  0x53   : > { %p2124_p11 = scmp.ne.s32.totalorder %s2119_s22, 0 }
  0x54   : > { %p2125_p0 = scmp.eq.s32.totalorder (!%p2124_p11), %s1857_s16, 0 }
  0x55   : > { %549 = sbr.rel (%p2124_p11) target bundleno = 1340 (0x53c), region = 88 }
  0x5a   : > { %1701 = dma.done.wait (%p2125_p0), [#allocation4], 64   ;;  %p2126_p13 = pmov %p2125_p0 }
  0x5b   : > { %p2127_p1 = pmov %p2125_p0 }
  0x5c   : > { %1703 = vsyncadd (%p2126_p13), [#allocation4], 4294967232 }
  0x5d   : > { %1705 = dma.done.wait (%p2127_p1), [#allocation7], 80   ;;  %p2128_p2 = pmov %p2125_p0 }
  0x5e   : > { %p2129_p9 = pmov %p2125_p0 }
  0x5f   : > { %1707 = vsyncadd (%p2128_p2), [#allocation7], 4294967216 }
  0x60   : > { %1709 = dma.done.wait (%p2129_p9), [#allocation10], 32   ;;  %p2130_p12 = pmov %p2125_p0 }
  0x61   : > { %p621_p3 = scmp.lt.s32.totalorder %s1857_s16, 1  ;;  %v1737_v1 = vmov 0.0   ;;  %vm1738_vm0 = vmmov 0   ;;  %vm651_vm1 = vcmask 1043456   ;;  %s2131_s19 = sld [smem:[#allocation22_spill]]  ;;  %vm647_vm2 = vcmask 64512  }
  0x62   : > { %1711 = vsyncadd (%p2130_p12), [#allocation10], 4294967264  ;;  %1363 = vmatprep.subr.bf16.mxu0 %v1737_v1  ;;  %1365 = vmatprep.mubr.msk.bf16.mxu0 %vm1738_vm0, %v1737_v1  ;;  %v634_v2 = vld [vmem:[#allocation3] sm:$0xf]  ;;  %v698_v5 = vld [vmem:[#allocation8] sm:$0xf]  ;;  %v754_v20 = vlaneseq }
  0x63   : > { %s1964_s28 = scalar_select %p621_p3, %s1857_s16, 1  ;;  %1369 = vmatprep.subr.bf16.mxu1 %v1737_v1  ;;  %1371 = vmatprep.mubr.msk.bf16.mxu1 %vm1738_vm0, %v1737_v1  ;;  %v653_v3 = vsel %vm651_vm1, %v634_v2, 0  ;;  %v711_v6 = vsel %vm651_vm1, %v698_v5, 0  ;;  %v1320_v7 = vld [vmem:[#allocation6] ss:$0 sm:$0xff]  ;;  %vm904_vm3 = vcmask 1045504  }
  0x64   : > { %1364 = vmatpush3.bf16.msra.mxu0 %v653_v3  ;;  %1370 = vmatpush3.bf16.msra.mxu1 %v711_v6  ;;  %v1519_v13 = vld [vmem:[%s2090_s7] sm:$0x3f]   ;;  %vm900_vm4 = vcmask 97280   ;;  %v1521_v21 = vld [vmem:[%s2088_s5 + $0x8] ss:$0 sps:$4 sm:$0xff]   ;;  %v755_v23 = vshrl.u32 %v754_v20, 7 }
  0x65   : > { %s1344_s22 = sshll.u32 %s1964_s28, 3  ;;  %1375 = vmatprep.subr.bf16.mxu0 %v1737_v1  ;;  %1383 = vmatprep.subr.bf16.mxu1 %v1737_v1  ;;  %v906_v18 = vsel %vm904_vm3, %v1519_v13, 0  ;;  %v1520_v19 = vld [vmem:[%s2091_s8] sm:$0x3f]   ;;  %v829_v22 = vsel %vm651_vm1, %v1521_v21, 0  ;;  %s1739_s18 = smov 8  }
  0x66   : > { %v1323_v24 = vld [vmem:[#allocation9] ss:$0 sm:$0xff]  ;;  %v1522_v26 = vld [vmem:[%s2088_s5] sm:$0xff]   ;;  %v756_v29 = vadd.s32 8, %v755_v23  ;;  %vm774_vm5 = vcmp.lt.s32.totalorder %v755_v23, 7  ;;  %vm757_vm7 = vcmp.eq.s32.totalorder %v755_v23, 0 }
  0x67   : > { %s625_s23 = scalar_lea.vmem %s2131_s19, %s1344_s22  ;;  %vm761_vm8 = vcmp.lt.s32.totalorder %v755_v23, 1  ;;  %s1740_s0 = smov 16   ;;  %v1741_v50 = vmov 0   ;;  %vm801_vm9 = vcmask 130048   ;;  %vm824_vm10 = vcmask 195584   ;;  %v1523_v63 = vld [vmem:[%s2092_s9] sm:$0xff]  }
  0x68   : > { %v1518_v4 = vld [vmem:[%s625_s23] sm:$0xff]   ;;  %vm771_vm6 = vcmp.eq.s32.totalorder %v756_v29, 15  ;;  %s1345_s19 = sshll.u32 %s1964_s28, 4  ;;  %1516 = vset.pattern.permute.xlu1 %v1741_v50  ;;  %1517 = vset.pattern.permute.xlu0 %v1741_v50  ;;  %v1524_v2 = vld [vmem:[%s2096_s13 + $0x8] sm:$0xff]   ;;  %vm874_vm11 = vcmask 261120   ;;  %vm1026_vm12 = vcmask 257024  }
  0x69   : > { %1366 = vmatmul.mubr.msk.bf16.vlgmr.msra.gmra.mxu0 %vm647_vm2, %v1518_v4  ;;  %s630_s30 = scalar_lea.vmem %s2094_s11, %s1345_s19  ;;  %v1525_v3 = vld [vmem:[%s2096_s13] sm:$0xff]   ;;  %v1526_v4 = vld [vmem:[%s2095_s12 + $0x8] sm:$0xff]   ;;  %vm1160_vm13 = vcmask 253952   ;;  %s619_s21 = sand.u32 1, %s1722_s27  }
  0x6a   : > { %1379 = vmatprep.mubr.msk.bf16.mxu0 %vm1738_vm0, %v1737_v1  ;;  %1376 = vmatpush3.bf16.msra.mxu0 %v829_v22  ;;  %v1011_v51 = vld [vmem:[%s630_s30] sm:$0xff]  ;;  %v1012_v52 = vld [vmem:[%s630_s30 + $0x8] sm:$0xf]  ;;  %v1325_v6 = vld [vmem:[#allocation11] ss:$0 sm:$0xff]  ;;  %s620_s2 = scalar_lea.vmem [#allocation12], %s619_s21 }
  0x6b   : > { %1377 = vmatprep.subr.bf16.mxu0 %v1737_v1  ;;  %1015 = vperm.xlu1 %1516, %v1011_v51   ;;  %v1527_v5 = vld [vmem:[%s2095_s12] sm:$0xff]   ;;  %s1185_s24 = sshll.u32 %s620_s2, 4  ;;  %s1341_s22 = sshll.u32 %s1857_s16, 4  ;;  %s2045_s24 = int_to_ptr.vmem [resolvable:$true] %s1185_s24 }
  0x6c   : > { %s1183_s19 = scalar_lea.hbm %s2100_s17, %s1341_s22  ;;  %s1173_s23 = scalar_lea.sflag [#allocation5], %s619_s21 }
  0x6d   : > { %s1658_s25 = scalar_lea.vmem %s2045_s24, 16  ;;  %p2132_p7 = scmp.ne.s32.totalorder %s2116_s20, 0 }
  0x6e   : > { %1378 = vmatpush3.bf16.msra.mxu0 %v1522_v26  ;;  %p1659_p4 = scmp.ne.s32.totalorder %s2045_s24, %s1658_s25  ;;  %s1742_s30 = smov [#allocation12]  }
  0x6f   : > { %1389 = vmatprep.subr.bf16.mxu0 %v1737_v1  ;;  %1020 = vperm.xlu1 %1516, %v1012_v52   ;;  %s1662_s28 = sshll.u32 %s1742_s30, 4  ;;  %s1663_s28 = int_to_ptr.vmem [resolvable:$false] %s1662_s28 }
  0x70   : > { %p1660_p5 = pnand %p1659_p4, %p2132_p7  ;;  %s1664_s16 = scalar_lea.vmem %s1663_s28, 32 }
  0x71   : > { %p1665_p10 = scmp.lt.s32.totalorder %s2045_s24, %s1663_s28  ;;  %p1666_p8 = scmp.lt.s32.totalorder %s1664_s16, %s1658_s25 }
  0x72   : > { %p1661_p6 = pneg %p1660_p5 }
  0x73   : > { %p1667_p11 = por %p1666_p8, %p1665_p10 }
  0x75   : > { %p1668_p0 = pnand %p1667_p11, %p1661_p6 }
  0xe6   : > { %v1016_v20 = vpop.permute.xlu1 %1015 }
 0x129   : > { %v689_v8 = vpop.f32.mrf.mxu0 }
 0x12a   : > { %v690_v10 = vadd.f32 %v1320_v7, %v689_v8 }
 0x12b   : > { %v1367_v9 = vpop.f32.mrf.mxu0 }
 0x12c   : > { %v696_v15 = vmax.f32 %v690_v10, 0.0 }
 0x12d   : > { %v692_v11 = vpop.f32.mrf.mxu0 }
 0x12e   : > { %v693_v12 = vadd.f32 %v1320_v7, %v692_v11 }
 0x12f   : > { %v1368_v14 = vpop.f32.mrf.mxu0 }
 0x130   : > { %v697_v16 = vmax.f32 %v693_v12, 0.0  ;;  %v1332_v14 = vld [vmem:[%s2093_s10] ss:$0 sm:$0xff] }
 0x132   : > { %v699_v17 = vpack.c.bf16 %v697_v16, %v696_v15 }
 0x134   : > { %1372 = vmatmul.mubr.msk.bf16.vlgmr.msra.gmra.mxu1 %vm647_vm2, %v699_v17 }
 0x135   : > { %1384 = vmatpush3.bf16.msra.mxu1 %v906_v18  ;;  %1385 = vmatprep.mubr.msk.bf16.mxu1 %vm1738_vm0, %v1737_v1 }
 0x136   : > { %1395 = vmatprep.subr.bf16.mxu1 %v1737_v1 }
 0x13c   : > { %1386 = vmatmul.mubr.msk.bf16.vlgmr.msra.gmra.mxu1 %vm900_vm4, %v1520_v19 }
 0x13d   : > { %1399 = vmatprep.mubr.msk.bf16.mxu1 %vm1738_vm0, %v1737_v1  ;;  %1396 = vmatpush3.bf16.msra.mxu1 %v1524_v2 }
 0x13e   : > { %1397 = vmatprep.subr.bf16.mxu1 %v1737_v1 }
 0x141   : > { %1398 = vmatpush3.bf16.msra.mxu1 %v1525_v3 }
 0x1f4   : > { %v747_v25 = vpop.f32.mrf.mxu1 }
 0x1f5   : > { %v748_v27 = vadd.f32 %v1323_v24, %v747_v25 }
 0x1f6   : > { %v1373_v28 = vpop.f32.mrf.mxu1 }
 0x1f7   : > { %v759_v32 = vrot.slane %v748_v27, 7  ;;  %v772_v34 = vrot.slane %v748_v27, 1 }
 0x1f8   : > { %v750_v30 = vpop.f32.mrf.mxu1 }
 0x1f9   : > { %v751_v31 = vadd.f32 %v1323_v24, %v750_v30 }
 0x1fa   : > { %v1374_v33 = vpop.f32.mrf.mxu1 }
 0x1fb   : > { %v760_v35 = vrot.slane %v751_v31, 7  ;;  %v773_v36 = vrot.slane %v751_v31, 1  ;;  %v1506_v37 = vpack.i.bf16 %v751_v31, %v748_v27  ;;  %v1021_v31 = vpop.permute.xlu1 %1020 }
 0x1fc   : > { %v942_v38 = vpop.f32.mrf.mxu1 }
 0x1fd   : > { %1507 = vrot.lane.b32.xlu0 %v1506_v37, %s1739_s18  ;;  %v775_v39 = vsel %vm774_vm5, %v772_v34, %v773_v36  ;;  %v776_v40 = vsel %vm774_vm5, %v773_v36, %v772_v34  ;;  %v762_v41 = vsel %vm761_vm8, %v759_v32, %v760_v35  ;;  %v763_v42 = vsel %vm761_vm8, %v760_v35, %v759_v32 }
 0x1fe   : > { %v782_v43 = vsel %vm771_vm6, 0.0, %v776_v40  ;;  %v768_v44 = vsel %vm757_vm7, 0.0, %v763_v42  ;;  %v1387_v45 = vpop.f32.mrf.mxu1 }
 0x1ff   : > { %v1511_v46 = vpack.i.bf16 %v782_v43, %v775_v39 }
 0x200   : > { %v945_v47 = vpop.f32.mrf.mxu1 }
 0x201   : > { %1512 = vrot.lane.b32.xlu0 %v1511_v46, %s1740_s0  ;;  %v951_v48 = vpack.c.bf16 %v945_v47, %v942_v38 }
 0x202   : > { %v1388_v49 = vpop.f32.mrf.mxu1 }
 0x26f   : > { %v1508_v53 = vpop.permute.xlu0 %1507 }
 0x270   : > { %v1510_v54 = vunpack.i.h.bf16 %v1508_v53  ;;  %v1509_v55 = vunpack.i.l.bf16 %v1508_v53  ;;  %v1155_v53 = vld [vmem:[%s2097_s14] sm:$0x1] }
 0x272   : > { %v799_v59 = vsel %vm647_vm2, %v768_v44, %v1509_v55  ;;  %v800_v60 = vsel %vm647_vm2, %v762_v41, %v1510_v54 }
 0x273   : > { %v1513_v56 = vpop.permute.xlu0 %1512 }
 0x274   : > { %v1515_v57 = vunpack.i.h.bf16 %v1513_v56  ;;  %v1514_v58 = vunpack.i.l.bf16 %v1513_v56 }
 0x276   : > { %v802_v61 = vsel %vm801_vm9, %v799_v59, %v1514_v58  ;;  %v803_v62 = vsel %vm801_vm9, %v800_v60, %v1515_v57  ;;  %v1158_v58 = vld [vmem:[%s2098_s15] sm:$0x1] }
 0x277   : > { %v807_v0 = vpack.c.bf16 %v803_v62, %v802_v61 }
 0x279   : > { %1380 = vmatmul.mubr.msk.bf16.vlgmr.msra.gmra.mxu0 %vm824_vm10, %v807_v0 }
 0x27a   : > { %1390 = vmatpush3.bf16.msra.mxu0 %v1523_v63  ;;  %1391 = vmatprep.mubr.msk.bf16.mxu0 %vm1738_vm0, %v1737_v1  ;;  %v1164_v63 = vld [vmem:[#allocation2] sm:$0x1] }
 0x27b   : > { %1403 = vmatprep.subr.bf16.mxu0 %v1737_v1 }
 0x281   : > { %1392 = vmatmul.mubr.msk.bf16.vlgmr.msra.gmra.mxu0 %vm801_vm9, %v951_v48 }
 0x282   : > { %1407 = vmatprep.mubr.msk.bf16.mxu0 %vm1738_vm0, %v1737_v1  ;;  %1404 = vmatpush3.bf16.msra.mxu0 %v1526_v4 }
 0x283   : > { %1405 = vmatprep.subr.bf16.mxu0 %v1737_v1 }
 0x286   : > { %1406 = vmatpush3.bf16.msra.mxu0 %v1527_v5 }
 0x339   : > { %v865_v7 = vpop.f32.mrf.mxu0 }
 0x33a   : > { %v866_v8 = vadd.f32 %v1325_v6, %v865_v7 }
 0x33b   : > { %v1381_v9 = vpop.f32.mrf.mxu0 }
 0x33c   : > { %v872_v11 = vmax.f32 %v866_v8, 0.0 }
 0x33d   : > { %v868_v10 = vpop.f32.mrf.mxu0 }
 0x33e   : > { %v869_v12 = vadd.f32 %v1325_v6, %v868_v10  ;;  %v875_v16 = vsel %vm874_vm11, %v872_v11, 0.0 }
 0x33f   : > { %v1382_v13 = vpop.f32.mrf.mxu0 }
 0x340   : > { %v873_v15 = vmax.f32 %v869_v12, 0.0 }
 0x341   : > { %v1002_v1 = vpop.f32.mrf.mxu0 }
 0x342   : > { %v876_v17 = vsel %vm874_vm11, %v873_v15, 0.0  ;;  %v1003_v18 = vadd.f32 %v1332_v14, %v1002_v1 }
 0x343   : > { %v877_v19 = vadd.f32 %v876_v17, %v875_v16  ;;  %v1393_v21 = vpop.f32.mrf.mxu0 }
 0x344   : > { %v1009_v22 = vmax.f32 %v1003_v18, 0.0 }
 0x345   : > { %v878_v23 = vrot.slane %v877_v19, 4  ;;  %v1005_v24 = vpop.f32.mrf.mxu0 }
 0x346   : > { %v1006_v25 = vadd.f32 %v1332_v14, %v1005_v24  ;;  %v1023_v28 = vmul.f32 %v1016_v20, %v1009_v22 }
 0x347   : > { %v879_v26 = vadd.f32 %v878_v23, %v877_v19  ;;  %v1394_v27 = vpop.f32.mrf.mxu0 }
 0x348   : > { %v1010_v29 = vmax.f32 %v1006_v25, 0.0  ;;  %v1025_v34 = vsel %vm874_vm11, %v1023_v28, 0.0 }
 0x349   : > { %v880_v30 = vrot.slane %v879_v26, 2 }
 0x34a   : > { %v1024_v32 = vmul.f32 %v1021_v31, %v1010_v29 }
 0x34b   : > { %v881_v33 = vadd.f32 %v880_v30, %v879_v26 }
 0x34c   : > { %v1027_v35 = vsel %vm1026_vm12, %v1024_v32, 0.0 }
 0x34d   : > { %v882_v36 = vrot.slane %v881_v33, 1  ;;  %v1028_v37 = vadd.f32 %v1027_v35, %v1025_v34 }
 0x34f   : > { %v883_v38 = vadd.f32 %v882_v36, %v881_v33  ;;  %v1029_v39 = vrot.slane %v1028_v37, 4 }
 0x351   : > { %v885_v40 = vmul.f32 0.0625, %v883_v38  ;;  %v1030_v41 = vadd.f32 %v1029_v39, %v1028_v37 }
 0x353   : > { %v1044_v42 = vpack.c.bf16 %v885_v40, %v885_v40  ;;  %v1031_v43 = vrot.slane %v1030_v41, 2 }
 0x355   : > { %v1032_v44 = vadd.f32 %v1031_v43, %v1030_v41  ;;  %1400 = vmatmul.mubr.msk.bf16.vlgmr.msra.gmra.mxu1 %vm874_vm11, %v1044_v42 }
 0x357   : > { %v1033_v45 = vrot.slane %v1032_v44, 1 }
 0x359   : > { %v1034_v46 = vadd.f32 %v1033_v45, %v1032_v44 }
 0x35b   : > { %v1039_v47 = vpack.c.bf16 %v1034_v46, %v1034_v46 }
 0x35d   : > { %1408 = vmatmul.mubr.msk.bf16.vlgmr.msra.gmra.mxu0 %vm874_vm11, %v1039_v47 }
 0x415   : > { %v1094_v48 = vpop.f32.mrf.mxu1 }
 0x417   : > { %v1401_v49 = vpop.f32.mrf.mxu1 }
 0x419   : > { %v1097_v50 = vpop.f32.mrf.mxu1 }
 0x41b   : > { %v1402_v51 = vpop.f32.mrf.mxu1 }
 0x41d   : > { %v1149_v52 = vpop.f32.mrf.mxu0 }
 0x41e   : > { %v1150_v54 = vadd.f32 %v1149_v52, %v1094_v48 }
 0x41f   : > { %v1409_v55 = vpop.f32.mrf.mxu0 }
 0x420   : > { %v1156_v56 = vadd.f32 %v1155_v53, %v1150_v54 }
 0x421   : > { %v1152_v57 = vpop.f32.mrf.mxu0 }
 0x422   : > { %v1157_v59 = vmax.f32 %v1156_v56, 0.0 }
 0x423   : > { %v1410_v60 = vpop.f32.mrf.mxu0 }
 0x424   : > { %v1159_v61 = vmul.f32 %v1158_v58, %v1157_v59 }
 0x426   : > { %v1161_v62 = vsel %vm1160_vm13, %v1159_v61, 0.0 }
 0x427   : > { %1162 = vadd.xlane.f32.xlu0 %v1161_v62 }
 0x4b0   : > { %v1163_v0 = vpop.xlane.xlu0 %1162 }
 0x4b1   : > { %v1165_v2 = vadd.f32 %v1164_v63, %v1163_v0 }
 0x4b3   : > { %1168 = vperm.xlu1 %1516, %v1165_v2  }
 0x52e   : > { %v1169_v3 = vpop.permute.xlu1 %1168 }
 0x52f   : > { %1171 = vst [vmem:[%s620_s2] sm:$0x1] %v1169_v3 }
 0x530   : > { %1671 = shalt.err (!%p1668_p0)
}
 0x531   : > { %s1672_s26 = scalar_lea.hbm %s1183_s19, 16  ;;  %s1676_s2 = scalar_lea.hbm %s2100_s17, 32 }
 0x532   : > { %p1673_p13 = scmp.ne.s32.totalorder %s1183_s19, %s1672_s26  ;;  %p1677_p9 = scmp.lt.s32.totalorder %s1183_s19, %s2100_s17 }
 0x533   : > { %p1678_p12 = scmp.lt.s32.totalorder %s1676_s2, %s1672_s26 }
 0x534   : > { %p1674_p1 = pnand %p1673_p13, %p2132_p7 }
 0x535   : > { %p1679_p3 = por %p1678_p12, %p1677_p9 }
 0x536   : > { %p1675_p2 = pneg %p1674_p1 }
 0x538   : > { %p1680_p4 = pnand %p1679_p3, %p1675_p2 }
 0x53a   : > { %1683 = shalt.err (!%p1680_p4)
}
 0x53b   : > { %1431 = dma.vmem_to_hbm [thread:$0]  (%p2132_p7), %s2045_s24, 16, %s1183_s19, %s1173_s23  }
 0x53c PF: > { %s2133_s0 = sld [smem:[#allocation17_spill]]  ;;  %p1463_p5 = scmp.ge.s32.totalorder %s1730_s29, 2 }
 0x53d   : > { %s2134_s25 = sld [smem:[#allocation21_spill]] }
 0x542   : > { %s1197_s30 = sand.u32 1, %s2133_s0  }
 0x543   : > { %p2135_p6 = scmp.ne.s32.totalorder %s2134_s25, 0  ;;  %s1198_s28 = scalar_lea.sflag [#allocation5], %s1197_s30 }
 0x545   : > { %p1450_p10 = pnand %p1463_p5, %p2135_p6 }
 0x547   : > { %p1451_p8 = pneg %p1450_p10 }
 0x549   : > { %1713 = dma.done.wait (%p1451_p8), %s1198_s28, 16  }
 0x54a   : > { %1715 = vsyncadd (%p1451_p8), %s1198_s28, 4294967280  ;;  %s2136_s29 = sld [smem:[#allocation19_spill]]  ;;  %s2139_s26 = smov %s1722_s27 }
 0x54b   : > { %s2137_s16 = sld [smem:[#allocation18_spill]] }
 0x54c   : > { %s2138_s28 = sld [smem:[#allocation20_spill]] }
 0x550   : > { %p32_p11 = scmp.ge.s32.totalorder %s2136_s29, 4  }
 0x551   : > { %s2140_s27 = smov %s2137_s16 }
 0x552   :  { %34 = sbr.rel (!%p32_p11) target bundleno = 10 (0xa), region = 147 }
 0x557   :  { %1202 = vsyncpa [#allocation4], 1 }
 0x558   :  { %1204 = vsyncpa [#allocation4 + $0x1], 1 }
 0x559   :  { %1205 = vsyncpa [#allocation7], 1 }
 0x55a   :  { %1206 = vsyncpa [#allocation10], 1 }
 0x55b   :  { %1207 = vsyncpa [#allocation5], 1 }
 0x55c   :  { %1209 = vsyncpa [#allocation5 + $0x1], 1 }

</bundles_post_ra>
